<compile_context>
chip_gen: v6e
topology: v6e:2x2x1
jax: 0.10.0
libtpu: 0.0.40
codegen_flags: <defaults>
</compile_context>

<pallas_src>
import jax
import jax.numpy as jnp
from jax.experimental import pallas as pl
from jax.experimental.pallas import tpu as pltpu


def se_kernel(x_ref, w1_ref, b1_ref, w2_ref, b2_ref, o_ref):
    # x_ref block: (B, C, HW) -- lane-dense last axis.
    xf = x_ref[...].astype(jnp.float32)                            # single cast, reused

    # Squeeze: global average over spatial (lane reduce), f32 accumulation.
    pooled = jnp.mean(xf, axis=-1)                                 # (B, C)

    # Excite path: channel "1x1 convs" are tiny; do them on the VPU/XLU as
    # broadcast-mul + sublane reduce instead of an M<=B sliver on the MXU.
    w1 = w1_ref[...].astype(jnp.float32)                           # (C, Cr)
    h = jnp.sum(pooled[:, :, None] * w1[None, :, :], axis=1)       # (B, Cr)
    h = jnp.maximum(h + b1_ref[...].astype(jnp.float32), 0.0)      # ReLU

    w2 = w2_ref[...].astype(jnp.float32)                           # (Cr, C)
    z = jnp.sum(h[:, :, None] * w2[None, :, :], axis=1)            # (B, C)
    z = z + b2_ref[...].astype(jnp.float32)

    # hsigmoid: relu6(z + 3) / 6  (multiply by constant 1/6, no divide)
    scale = jnp.clip(z + 3.0, 0.0, 6.0) * (1.0 / 6.0)              # (B, C)

    # Channel-wise rescale; f32 math, single cast on store (no-op for f32 in).
    o_ref[...] = (xf * scale[:, :, None]).astype(o_ref.dtype)


def _pick_batch_block(N, C, HW, itemsize):
    """Largest divisor of N whose double-buffered in+out block fits a
    conservative VMEM budget, preferring >= 2 grid steps (v7x megacore)."""
    budget = 32 * 1024 * 1024  # safe across v5e/v6e/v7x scoped limits
    per_elem = C * HW * itemsize * 2 * 2  # (input + output) x double-buffer
    max_b = max(1, budget // per_elem)

    best = 1
    for b in range(1, N + 1):
        if N % b == 0 and b <= max_b:
            best = b
    # Leave at least 2 grid steps when possible so both v7x TCs get work.
    if best == N and N > 1:
        for b in range(N - 1, 0, -1):
            if N % b == 0 and b <= max_b:
                best = b
                break
    return best


def se_module(x, w1, b1, w2, b2):
    """x: (N, C, H, W).  w1: (C, Cr), b1: (1, Cr), w2: (Cr, C), b2: (1, C)."""
    N, C, H, W = x.shape
    HW = H * W
    Cr = w1.shape[1]
    itemsize = jnp.dtype(x.dtype).itemsize

    # Flatten spatial dims (free: trailing dims are contiguous) so the last
    # block axis is lane-dense.
    x_flat = x.reshape(N, C, HW)

    B = _pick_batch_block(N, C, HW, itemsize)
    grid = (N // B,)

    param_bytes = (w1.size + b1.size + w2.size + b2.size) * jnp.dtype(w1.dtype).itemsize
    cost = pl.CostEstimate(
        flops=2 * N * C * HW + 4 * N * C * Cr,       # pool + 2 tiny matmuls + rescale
        transcendentals=0,
        bytes_accessed=2 * N * C * HW * itemsize + param_bytes,
    )

    # Budget above keeps 2x(in+out) <= ~32 MiB; 48 MiB limit leaves headroom
    # while staying under v7x's 64 MiB physical VMEM.
    vmem_limit = 48 * 1024 * 1024

    # NOTE: kernel is HBM-bandwidth bound; deeper buffering (pl.Buffered(3))
    # did not look necessary since compute per block is trivial.
    out_flat = pl.pallas_call(
        se_kernel,
        out_shape=jax.ShapeDtypeStruct((N, C, HW), x.dtype),
        grid_spec=pltpu.PrefetchScalarGridSpec(
            num_scalar_prefetch=0,
            grid=grid,
            in_specs=[
                pl.BlockSpec((B, C, HW), lambda n: (n, 0, 0)),
                pl.BlockSpec((C, Cr), lambda n: (0, 0)),
                pl.BlockSpec((1, Cr), lambda n: (0, 0)),
                pl.BlockSpec((Cr, C), lambda n: (0, 0)),
                pl.BlockSpec((1, C), lambda n: (0, 0)),
            ],
            out_specs=pl.BlockSpec((B, C, HW), lambda n: (n, 0, 0)),
        ),
        compiler_params=pltpu.CompilerParams(
            dimension_semantics=("parallel",),
            vmem_limit_bytes=vmem_limit,
        ),
        cost_estimate=cost,
    )(x_flat, w1, b1, w2, b2)

    return out_flat.reshape(N, C, H, W)


def se_reference(x, w1, b1, w2, b2):
    """Pure-JAX reference mirroring the PyTorch forward."""
    xf = x.astype(jnp.float32)
    pooled = jnp.mean(xf, axis=(2, 3))                       # (N, C)
    h = jnp.maximum(pooled @ w1 + b1, 0.0)                   # (N, Cr)
    z = h @ w2 + b2                                          # (N, C)
    scale = jnp.clip(z + 3.0, 0.0, 6.0) / 6.0
    return (xf * scale[:, :, None, None]).astype(x.dtype)


if __name__ == "__main__":
    key = jax.random.PRNGKey(0)
    k_x, k_w1, k_b1, k_w2, k_b2 = jax.random.split(key, 5)

    N, C, H, W = 2, 8, 16, 16
    reduction = 4
    Cr = C // reduction

    x = jax.random.normal(k_x, (N, C, H, W), dtype=jnp.float32)

    # Deterministic synthetic parameters (shapes from Conv2d(C, C//r, 1) / Conv2d(C//r, C, 1)).
    # PyTorch conv1.weight is (Cr, C, 1, 1); stored here pre-transposed as (C, Cr) for matmul.
    w1 = jax.random.normal(k_w1, (C, Cr), dtype=jnp.float32) * 0.1
    b1 = jax.random.normal(k_b1, (1, Cr), dtype=jnp.float32) * 0.1
    w2 = jax.random.normal(k_w2, (Cr, C), dtype=jnp.float32) * 0.1
    b2 = jax.random.normal(k_b2, (1, C), dtype=jnp.float32) * 0.1

    out = se_module(x, w1, b1, w2, b2)
    out = jax.block_until_ready(out)

    ref = se_reference(x, w1, b1, w2, b2)
    assert out.shape == (N, C, H, W)
    assert jnp.allclose(out, ref, atol=1e-5, rtol=1e-5), "mismatch vs reference"

    print("KERNEL_OK")
</pallas_src>

<mosaic_0001>
module attributes {stable_mosaic.version = 11 : i64} {
  func.func @se_kernel(%arg0: i32, %arg1: memref<1x8x256xf32, #tpu.memory_space<vmem>>, %arg2: memref<8x2xf32, #tpu.memory_space<vmem>>, %arg3: memref<1x2xf32, #tpu.memory_space<vmem>>, %arg4: memref<2x8xf32, #tpu.memory_space<vmem>>, %arg5: memref<1x8xf32, #tpu.memory_space<vmem>>, %arg6: memref<1x8x256xf32, #tpu.memory_space<vmem>>) attributes {dimension_semantics = [#tpu.dimension_semantics<parallel>], iteration_bounds = array<i64: 2>, scalar_prefetch = 0 : i64, scratch_operands = 0 : i64, tpu.core_type = #tpu.core_type<tc>, window_params = [{transform_indices = @transform_0, window_bounds = array<i64: 1, 8, 256>}, {pipeline_mode = #tpu.pipeline_mode<synchronous>, transform_indices = @transform_1, window_bounds = array<i64: 8, 2>}, {pipeline_mode = #tpu.pipeline_mode<synchronous>, transform_indices = @transform_2, window_bounds = array<i64: 1, 2>}, {pipeline_mode = #tpu.pipeline_mode<synchronous>, transform_indices = @transform_3, window_bounds = array<i64: 2, 8>}, {pipeline_mode = #tpu.pipeline_mode<synchronous>, transform_indices = @transform_4, window_bounds = array<i64: 1, 8>}, {transform_indices = @transform_5, window_bounds = array<i64: 1, 8, 256>}]} {
    %c0 = arith.constant 0 : index
    %c0_0 = arith.constant 0 : index
    %c0_1 = arith.constant 0 : index
    %0 = vector.load %arg1[%c0, %c0_0, %c0_1] : memref<1x8x256xf32, #tpu.memory_space<vmem>>, vector<1x8x256xf32>
    %cst = arith.constant dense<0.000000e+00> : vector<1x8xf32>
    %1 = vector.multi_reduction <add>, %0, %cst [2] : vector<1x8x256xf32> to vector<1x8xf32>
    %cst_2 = arith.constant 2.560000e+02 : f32
    %2 = vector.broadcast %cst_2 : f32 to vector<1x8xf32>
    %3 = arith.divf %1, %2 : vector<1x8xf32>
    %c0_3 = arith.constant 0 : index
    %c0_4 = arith.constant 0 : index
    %4 = vector.load %arg2[%c0_3, %c0_4] : memref<8x2xf32, #tpu.memory_space<vmem>>, vector<8x2xf32>
    %5 = vector.shape_cast %3 : vector<1x8xf32> to vector<1x8x1xf32>
    %6 = vector.shape_cast %4 : vector<8x2xf32> to vector<1x8x2xf32>
    %7 = vector.broadcast %5 : vector<1x8x1xf32> to vector<1x8x2xf32>
    %8 = arith.mulf %7, %6 : vector<1x8x2xf32>
    %cst_5 = arith.constant dense<0.000000e+00> : vector<1x2xf32>
    %9 = vector.multi_reduction <add>, %8, %cst_5 [1] : vector<1x8x2xf32> to vector<1x2xf32>
    %c0_6 = arith.constant 0 : index
    %c0_7 = arith.constant 0 : index
    %10 = vector.load %arg3[%c0_6, %c0_7] : memref<1x2xf32, #tpu.memory_space<vmem>>, vector<1x2xf32>
    %11 = arith.addf %9, %10 : vector<1x2xf32>
    %cst_8 = arith.constant 0.000000e+00 : f32
    %12 = vector.broadcast %cst_8 : f32 to vector<1x2xf32>
    %13 = arith.maximumf %11, %12 : vector<1x2xf32>
    %c0_9 = arith.constant 0 : index
    %c0_10 = arith.constant 0 : index
    %14 = vector.load %arg4[%c0_9, %c0_10] : memref<2x8xf32, #tpu.memory_space<vmem>>, vector<2x8xf32>
    %15 = vector.shape_cast %13 : vector<1x2xf32> to vector<1x2x1xf32>
    %16 = vector.shape_cast %14 : vector<2x8xf32> to vector<1x2x8xf32>
    %17 = vector.broadcast %15 : vector<1x2x1xf32> to vector<1x2x8xf32>
    %18 = arith.mulf %17, %16 : vector<1x2x8xf32>
    %cst_11 = arith.constant dense<0.000000e+00> : vector<1x8xf32>
    %19 = vector.multi_reduction <add>, %18, %cst_11 [1] : vector<1x2x8xf32> to vector<1x8xf32>
    %c0_12 = arith.constant 0 : index
    %c0_13 = arith.constant 0 : index
    %20 = vector.load %arg5[%c0_12, %c0_13] : memref<1x8xf32, #tpu.memory_space<vmem>>, vector<1x8xf32>
    %21 = arith.addf %19, %20 : vector<1x8xf32>
    %cst_14 = arith.constant 3.000000e+00 : f32
    %22 = vector.broadcast %cst_14 : f32 to vector<1x8xf32>
    %23 = arith.addf %21, %22 : vector<1x8xf32>
    %cst_15 = arith.constant 0.000000e+00 : f32
    %cst_16 = arith.constant 6.000000e+00 : f32
    %24 = vector.broadcast %cst_15 : f32 to vector<1x8xf32>
    %25 = arith.maximumf %24, %23 : vector<1x8xf32>
    %26 = vector.broadcast %cst_16 : f32 to vector<1x8xf32>
    %27 = arith.minimumf %26, %25 : vector<1x8xf32>
    %cst_17 = arith.constant 0.166666672 : f32
    %28 = vector.broadcast %cst_17 : f32 to vector<1x8xf32>
    %29 = arith.mulf %27, %28 : vector<1x8xf32>
    %30 = vector.shape_cast %29 : vector<1x8xf32> to vector<1x8x1xf32>
    %31 = vector.broadcast %30 : vector<1x8x1xf32> to vector<1x8x256xf32>
    %32 = arith.mulf %0, %31 : vector<1x8x256xf32>
    %c0_18 = arith.constant 0 : index
    %c0_19 = arith.constant 0 : index
    %c0_20 = arith.constant 0 : index
    %33 = vector.load %arg6[%c0_18, %c0_19, %c0_20] : memref<1x8x256xf32, #tpu.memory_space<vmem>>, vector<1x8x256xf32>
    tpu.vector_store %arg6[%c0_18, %c0_19, %c0_20], %32 {strides = array<i32>} : memref<1x8x256xf32, #tpu.memory_space<vmem>>, vector<1x8x256xf32>,
    return
  }
  func.func @transform_0(%arg0: i32) -> (i32, i32, i32) {
    %c0_i32 = arith.constant 0 : i32
    %c0_i32_0 = arith.constant 0 : i32
    %c0_i32_1 = arith.constant 0 : i32
    return %arg0, %c0_i32, %c0_i32_0 : i32, i32, i32
  }
  func.func @transform_1(%arg0: i32) -> (i32, i32) {
    %c0_i32 = arith.constant 0 : i32
    %c0_i32_0 = arith.constant 0 : i32
    %c0_i32_1 = arith.constant 0 : i32
    return %c0_i32, %c0_i32_0 : i32, i32
  }
  func.func @transform_2(%arg0: i32) -> (i32, i32) {
    %c0_i32 = arith.constant 0 : i32
    %c0_i32_0 = arith.constant 0 : i32
    %c0_i32_1 = arith.constant 0 : i32
    return %c0_i32, %c0_i32_0 : i32, i32
  }
  func.func @transform_3(%arg0: i32) -> (i32, i32) {
    %c0_i32 = arith.constant 0 : i32
    %c0_i32_0 = arith.constant 0 : i32
    %c0_i32_1 = arith.constant 0 : i32
    return %c0_i32, %c0_i32_0 : i32, i32
  }
  func.func @transform_4(%arg0: i32) -> (i32, i32) {
    %c0_i32 = arith.constant 0 : i32
    %c0_i32_0 = arith.constant 0 : i32
    %c0_i32_1 = arith.constant 0 : i32
    return %c0_i32, %c0_i32_0 : i32, i32
  }
  func.func @transform_5(%arg0: i32) -> (i32, i32, i32) {
    %c0_i32 = arith.constant 0 : i32
    %c0_i32_0 = arith.constant 0 : i32
    %c0_i32_1 = arith.constant 0 : i32
    return %arg0, %c0_i32, %c0_i32_0 : i32, i32, i32
  }
}

</mosaic_0001>

<bundles_post_ra>
// kernel: tpu_custom_call.1
= control target key start
LH: loop header
LB: loop body
LE: loop exit
PB: predicated region body
PF: predicated region fallthrough
CT: control target
= control target key end

     0   :  { %10 = vsyncpa [#allocation3], 0  ;;  %s731_s0 = inlined_call_operand.hbm [shape: f32[2,8,256], index: 0, kind: input, shape index: {}]   ;;  %s732_s1 = inlined_call_operand.vmem [shape: f32[8,2], index: 1, kind: input, shape index: {}]   ;;  %s733_s2 = inlined_call_operand.vmem [shape: f32[1,2], index: 2, kind: input, shape index: {}]   ;;  %s734_s3 = inlined_call_operand.vmem [shape: f32[2,8], index: 3, kind: input, shape index: {}]   ;;  %s735_s4 = inlined_call_operand.vmem [shape: f32[1,8], index: 4, kind: input, shape index: {}]   ;;  %s736_s5 = inlined_call_operand.hbm [shape: f32[2,8,256], index: 5, kind: output, shape index: {}]  }
   0x1   :  { %12 = vsyncpa [#allocation3 + $0x1], 0 }
   0x2   :  { %13 = vsyncpa [#allocation4], 0 }
   0x3   :  { %15 = vsyncpa [#allocation4 + $0x1], 0  ;;  %s568_s18 = smov 0   ;;  %s570_s19 = smov 0  }
   0x4   :  { %s572_s20 = smov 0   ;;  %s574_s21 = smov 0  }
   0x5 LB: > { %s589_s22 = sadd.s32 4294967295, %s534_s21   ;;  %s380_s23 = sadd.s32 4294967294, %s534_s21   ;;  %s534_s21 = sphi %s574_s21, %s753_s21   ;;  %s530_s20 = sphi %s572_s20, %s752_s20   ;;  %s526_s19 = sphi %s570_s19, %s751_s19   ;;  %s522_s18 = sphi %s568_s18, %s750_s18  }
   0x6   : > { %s593_s24 = sadd.s32 1, %s534_s21   ;;  %s28_s25 = sadd.s32 1, %s530_s20 }
   0x7   : > { %s25_s26 = ssub.s32 %s534_s21, %s593_s24  ;;  %p35_p0 = scmp.ne.s32.totalorder %s530_s20, %s526_s19 }
   0x8   : > { %p26_p1 = scmp.eq.s32.totalorder %s25_s26, 0  ;;  %p36_p2 = scmp.eq.s32.totalorder %s534_s21, 0 }
   0x9   : > { %p41_p3 = scmp.ne.s32.totalorder %s526_s19, %s522_s18  ;;  %p42_p4 = scmp.eq.s32.totalorder %s589_s22, 0 }
   0xa   : > { %s605_s27 = scalar_select %p26_p1, %s530_s20, %s28_s25  }
   0xb   : > { %p607_p5 = por %p36_p2, %p35_p0  ;;  %p611_p6 = por %p42_p4, %p41_p3 }
   0xc   : > { %p149_p7 = scmp.eq.s32.totalorder %s589_s22, 1  ;;  %p155_p8 = scmp.eq.s32.totalorder %s380_s23, 1 }
   0xd   : > { %s740_s29 = scalar_select %p611_p6, 1, 0 }
   0xe   : > { %p408_p10 = scmp.lt.s32.totalorder %s534_s21, 2  ;;  %p618_p11 = por %p149_p7, %p35_p0 }
   0xf   : > { %p622_p12 = por %p155_p8, %p41_p3  ;;  %s187_s7 = sand.u32 1, %s530_s20  }
  0x10   : > { %s741_s30 = scalar_select %p618_p11, 1, 0 }
  0x11   : > { %s742_s6 = scalar_select %p622_p12, 1, 0 }
  0x12   : > { %s394_s8 = sshll.u32 %s534_s21, 8  ;;  %s383_s9 = sshll.u32 %s187_s7, 4 }
  0x13   : > { %s631_s12 = scalar_lea.hbm %s731_s0, %s394_s8  ;;  %s191_s13 = scalar_lea.vmem [#allocation2], %s383_s9 }
  0x14   : > { %s199_s14 = sshll.u32 %s191_s13, 4  ;;  %p635_p13 = pnand %p408_p10, %p607_p5  ;;  %s639_s14 = int_to_ptr.vmem [resolvable:$true] %s199_s14 }
  0x15   : > { %s188_s16 = scalar_lea.sflag [#allocation3], %s187_s7  ;;  %s442_s17 = scalar_lea.hbm %s631_s12, 256 }
  0x16   : > { %p443_p2 = scmp.ne.s32.totalorder %s631_s12, %s442_s17  ;;  %p444_p3 = pneg %p635_p13 }
  0x17   : > { %s447_s26 = scalar_lea.hbm %s731_s0, 512  ;;  %p448_p5 = scmp.lt.s32.totalorder %s631_s12, %s731_s0 }
  0x18   : > { %p445_p4 = pnand %p444_p3, %p443_p2  ;;  %p449_p8 = scmp.lt.s32.totalorder %s447_s26, %s442_s17 }
  0x1a   : > { %p446_p7 = pneg %p445_p4  ;;  %p450_p10 = por %p449_p8, %p448_p5 }
  0x1c   : > { %p451_p9 = pnand %p450_p10, %p446_p7 }
  0x1e   : > { %454 = shalt.err (!%p451_p9)
}
  0x1f   : > { %s455_s7 = scalar_lea.vmem %s639_s14, 256  ;;  %s536_s9 = smov [#allocation2]  }
  0x20   : > { %p456_p0 = scmp.ne.s32.totalorder %s639_s14, %s455_s7  ;;  %s460_s10 = sshll.u32 %s536_s9, 4  ;;  %s461_s10 = int_to_ptr.vmem [resolvable:$false] %s460_s10 }
  0x21   : > { %s462_s11 = scalar_lea.vmem %s461_s10, 512  ;;  %p463_p4 = scmp.lt.s32.totalorder %s639_s14, %s461_s10 }
  0x22   : > { %p458_p1 = pnand %p456_p0, %p444_p3  ;;  %p464_p12 = scmp.lt.s32.totalorder %s462_s11, %s455_s7 }
  0x24   : > { %p459_p2 = pneg %p458_p1  ;;  %p465_p11 = por %p464_p12, %p463_p4 }
  0x26   : > { %p466_p6 = pnand %p465_p11, %p459_p2 }
  0x28   : > { %469 = shalt.err (!%p466_p6)
}
  0x29   : > { %403 = dma.hbm_to_vmem [thread:$0]  (!%p635_p13), %s631_s12, 256, %s639_s14, %s188_s16  }
  0x2a   : > { %p744_p9 = scmp.lt.s32.totalorder %s534_s21, 3  ;;  %p745_p7 = scmp.ge.s32.totalorder %s534_s21, 1 }
  0x2c   : > { %p205_p0 = pnand %p745_p7, %p744_p9 }
  0x2d   : > { %s666_s13 = sand.u32 (!%p205_p0), 1, %s526_s19   ;;  %p746_p6 = scmp.ne.s32.totalorder (!%p205_p0), %s740_s29, 0 }
  0x2e   : > { %208 = sbr.rel (%p205_p0) target bundleno = 488 (0x1e8), region = 40  ;;  %s387_s17 = sshll.u32 (!%p205_p0), %s666_s13, 4 }
  0x2f   : > { %s211_s23 = scalar_lea.sflag (!%p205_p0), [#allocation3], %s666_s13  ;;  %s214_s15 = scalar_lea.vmem (!%p205_p0), [#allocation2], %s387_s17 }
  0x33   : > { %513 = dma.done.wait (%p746_p6), %s211_s23, 256  }
  0x34   : > { %515 = vsyncadd (%p746_p6), %s211_s23, 4294967040  ;;  %v241_v0 = vld [vmem:[%s214_s15] sm:$0xff]  ;;  %v242_v1 = vld [vmem:[%s214_s15 + $0x8] sm:$0xff]  ;;  %vm250_vm0 = vcmask 15360   ;;  %v262_v11 = vlaneseq  ;;  %vm270_vm1 = vcmask 58368   ;;  %s395_s7 = sshll.u32 %s589_s22, 8 }
  0x35   : > { %v243_v2 = vadd.f32 %v242_v1, %v241_v0  ;;  %v248_v3 = vld [vmem:[%s732_s1] sm:$0xff]  ;;  %s240_s9 = scalar_lea.vmem [#allocation5], %s387_s17  ;;  %s694_s15 = scalar_lea.hbm %s736_s5, %s395_s7 }
  0x36   : > { %v263_v14 = vshrl.u32 %v262_v11, 7  ;;  %v258_v15 = vld [vmem:[%s733_s2] sm:$0x1]  ;;  %s310_s10 = sshll.u32 %s240_s9, 4  ;;  %s296_s12 = scalar_lea.sflag [#allocation4], %s666_s13  ;;  %s311_s10 = int_to_ptr.vmem [resolvable:$true] %s310_s10 }
  0x37   : > { %244 = vadd.xlane.f32.xlu0 %v243_v2  ;;  %v261_v21 = vld [vmem:[%s734_s3] sm:$0x3]  ;;  %s470_s14 = scalar_lea.vmem %s311_s10, 256  ;;  %p747_p12 = scmp.ne.s32.totalorder %s741_s30, 0 }
  0x38   : > { %v264_v18 = vsub.s32 0, %v263_v14  ;;  %v278_v30 = vld [vmem:[%s735_s4] sm:$0x1]  ;;  %p471_p11 = scmp.ne.s32.totalorder %s311_s10, %s470_s14  ;;  %s537_s22 = smov [#allocation5]  }
  0x39   : > { %s474_s17 = sshll.u32 %s537_s22, 4  ;;  %s475_s17 = int_to_ptr.vmem [resolvable:$false] %s474_s17 }
  0x3a   : > { %p472_p13 = pnand %p471_p11, %p747_p12  ;;  %s476_s29 = scalar_lea.vmem %s475_s17, 512 }
  0x3b   : > { %p477_p3 = scmp.lt.s32.totalorder %s311_s10, %s475_s17  ;;  %p478_p5 = scmp.lt.s32.totalorder %s476_s29, %s470_s14 }
  0x3c   : > { %p473_p1 = pneg %p472_p13 }
  0x3d   : > { %p479_p8 = por %p478_p5, %p477_p3 }
  0x3f   : > { %p480_p10 = pnand %p479_p8, %p473_p1 }
  0xc0   : > { %v245_v4 = vpop.xlane.xlu0 %244 }
  0xc1   : > { %v247_v5 = vmul.f32 0.00390625, %v245_v4 }
  0xc3   : > { %v249_v6 = vmul.f32 %v248_v3, %v247_v5 }
  0xc5   : > { %v251_v7 = vsel %vm250_vm0, %v249_v6, 0.0 }
  0xc6   : > { %v252_v8 = vrot.slane %v251_v7, 4 }
  0xc8   : > { %v253_v9 = vadd.f32 %v252_v8, %v251_v7 }
  0xca   : > { %v254_v10 = vrot.slane %v253_v9, 2 }
  0xcc   : > { %v255_v12 = vadd.f32 %v254_v10, %v253_v9 }
  0xce   : > { %v256_v13 = vrot.slane %v255_v12, 1 }
  0xd0   : > { %v257_v16 = vadd.f32 %v256_v13, %v255_v12 }
  0xd2   : > { %v259_v17 = vadd.f32 %v258_v15, %v257_v16 }
  0xd4   : > { %v260_v19 = vmax.f32 %v259_v17, 0.0 }
  0xd6   : > { %v265_v20 = vrot.slane %v260_v19, %v264_v18 }
  0xd8   : > { %267 = vbcast.lane.b32.xlu0 %v265_v20, 256 }
 0x14a   : > { %v268_v22 = vpop.permute.xlu0 %267 }
 0x14b   : > { %v269_v23 = vmul.f32 %v268_v22, %v261_v21 }
 0x14d   : > { %v271_v24 = vsel %vm270_vm1, %v269_v23, 0.0 }
 0x14e   : > { %v272_v25 = vrot.slane %v271_v24, 4 }
 0x150   : > { %v273_v26 = vadd.f32 %v272_v25, %v271_v24 }
 0x152   : > { %v274_v27 = vrot.slane %v273_v26, 2 }
 0x154   : > { %v275_v28 = vadd.f32 %v274_v27, %v273_v26 }
 0x156   : > { %v276_v29 = vrot.slane %v275_v28, 1 }
 0x158   : > { %v277_v31 = vadd.f32 %v276_v29, %v275_v28 }
 0x15a   : > { %v279_v32 = vadd.f32 %v278_v30, %v277_v31 }
 0x15c   : > { %v280_v33 = vadd.f32 3.0, %v279_v32 }
 0x15e   : > { %v281_v34 = vmax.f32 %v280_v33, 0.0 }
 0x160   : > { %v282_v35 = vmin.f32 %v281_v34, 6.0 }
 0x162   : > { %v283_v36 = vmul.f32 0.16666667, %v282_v35 }
 0x164   : > { %v287_v37 = vrot.slane %v283_v36, %v264_v18 }
 0x166   : > { %289 = vbcast.lane.b32.xlu1 %v287_v37, 256 }
 0x1d8   : > { %v290_v38 = vpop.permute.xlu1 %289 }
 0x1d9   : > { %v291_v39 = vmul.f32 %v290_v38, %v241_v0  ;;  %v292_v40 = vmul.f32 %v290_v38, %v242_v1 }
 0x1db   : > { %293 = vst [vmem:[%s240_s9] sm:$0xff] %v291_v39  ;;  %294 = vst [vmem:[%s240_s9 + $0x8] sm:$0xff] %v292_v40 }
 0x1dc   : > { %483 = shalt.err (!%p480_p10)
}
 0x1dd   : > { %s484_s16 = scalar_lea.hbm %s694_s15, 256  ;;  %s488_s26 = scalar_lea.hbm %s736_s5, 512 }
 0x1de   : > { %p485_p2 = scmp.ne.s32.totalorder %s694_s15, %s484_s16  ;;  %p489_p7 = scmp.lt.s32.totalorder %s694_s15, %s736_s5 }
 0x1df   : > { %p490_p0 = scmp.lt.s32.totalorder %s488_s26, %s484_s16 }
 0x1e0   : > { %p486_p4 = pnand %p485_p2, %p747_p12 }
 0x1e1   : > { %p491_p6 = por %p490_p0, %p489_p7 }
 0x1e2   : > { %p487_p9 = pneg %p486_p4 }
 0x1e4   : > { %p492_p11 = pnand %p491_p6, %p487_p9 }
 0x1e6   : > { %495 = shalt.err (!%p492_p11)
}
 0x1e7   : > { %398 = dma.vmem_to_hbm [thread:$0]  (%p747_p12), %s311_s10, 256, %s694_s15, %s296_s12  }
 0x1e8 PF: > { %s322_s7 = sand.u32 1, %s522_s18   ;;  %p748_p13 = scmp.ne.s32.totalorder %s742_s6, 0 }
 0x1e9   : > { %p749_p1 = scmp.ge.s32.totalorder %s534_s21, 2  ;;  %s323_s9 = scalar_lea.sflag [#allocation4], %s322_s7 }
 0x1eb   : > { %p405_p3 = pnand %p749_p1, %p748_p13 }
 0x1ed   : > { %p406_p5 = pneg %p405_p3 }
 0x1ef   : > { %517 = dma.done.wait (%p406_p5), %s323_s9, 256  }
 0x1f0   : > { %519 = vsyncadd (%p406_p5), %s323_s9, 4294967040  ;;  %p18_p8 = scmp.ge.s32.totalorder %s593_s24, 4   ;;  %s750_s18 = smov %s526_s19 }
 0x1f1   : > { %s751_s19 = smov %s530_s20  ;;  %s752_s20 = smov %s605_s27 }
 0x1f2   : > { %s753_s21 = smov %s593_s24  ;;  %20 = sbr.rel (!%p18_p8) target bundleno = 5 (0x5), region = 85 }
 0x1f7   :  { %328 = vsyncpa [#allocation3], 1 }
 0x1f8   :  { %330 = vsyncpa [#allocation3 + $0x1], 1 }
 0x1f9   :  { %331 = vsyncpa [#allocation4], 1 }
 0x1fa   :  { %333 = vsyncpa [#allocation4 + $0x1], 1 }

</bundles_post_ra>
